<compile_context>
chip_gen: v7x
topology: tpu7x:2x2x1
jax: 0.10.0
libtpu: 0.0.40
codegen_flags: <defaults>
</compile_context>

<pallas_src>
import functools

import jax
import jax.numpy as jnp
from jax.experimental import pallas as pl
from jax.experimental.pallas import tpu as pltpu


def _round_up(n, m):
    return ((n + m - 1) // m) * m


def _fc_tanh_kernel(bias_ref, x_ref, w_ref, o_ref, acc_ref, *, feat, tk, ragged_k):
    """Grid = (batch tiles, feature tiles); axis 1 reduces over features.

    bias_ref: SMEM (1,)          scalar-prefetched bias
    x_ref:    VMEM (tm, tk)      batch-tile x feature-tile of the input
    w_ref:    VMEM (1, tk)       feature-tile of the weight row
    o_ref:    VMEM (tm, 1)       per-row outputs for this batch tile
    acc_ref:  VMEM (tm, 1) f32   running per-row dot products
    """
    k = pl.program_id(1)

    @pl.when(k == 0)
    def _():
        acc_ref[...] = jnp.zeros_like(acc_ref)

    x = x_ref[...].astype(jnp.float32)
    w = w_ref[...].astype(jnp.float32)          # (1, tk) -> sublane broadcast
    prod = x * w                                # (tm, tk), VPU (hidden by DMA)

    if ragged_k:
        # Last feature tile extends past F: the DMA pad region is unspecified,
        # so zero its contribution before reducing.
        lane = jax.lax.broadcasted_iota(jnp.int32, prod.shape, 1)
        prod = jnp.where(lane < (feat - k * tk), prod, 0.0)

    acc_ref[...] += jnp.sum(prod, axis=1, keepdims=True)   # lane-axis reduce

    @pl.when(k == pl.num_programs(1) - 1)
    def _():
        o_ref[...] = jnp.tanh(acc_ref[...] + bias_ref[0]).astype(o_ref.dtype)


def generator_forward(x, weight, bias, *, block_m=512, block_k=None,
                      x_tile_bytes=4 * 1024 * 1024):
    """tanh(x.reshape(-1, F) @ weight.T + bias).

    x:      (..., S, H) with S * H == F (any leading batch dims)
    weight: (1, F)  -- PyTorch nn.Linear(F, 1).weight layout
    bias:   (1,)    -- PyTorch nn.Linear(F, 1).bias
    returns (B, 1), B = prod(leading dims of x)
    """
    out_features, feat = weight.shape
    assert out_features == 1, "Generator has a single output unit"
    x_flat = x.reshape(-1, feat)
    batch = x_flat.shape[0]
    itemsize = jnp.dtype(x_flat.dtype).itemsize

    # Batch tiling: a single full-extent tile when it fits (block dim == array
    # dim is always legal -> no padding, no extra HBM traffic); otherwise
    # 128-aligned tiles with a ragged, write-masked last tile.
    if batch <= block_m:
        tm, n_b = batch, 1
    else:
        tm = max(128, (int(block_m) // 128) * 128)
        n_b = pl.cdiv(batch, tm)

    # Feature (reduction) tiling: as large as the VMEM budget allows (rows is
    # the sublane footprint of the x tile), balanced so all steps are equal.
    rows = _round_up(max(tm, 1), 8)
    tk_cap = max(128, (int(x_tile_bytes) // (rows * itemsize)) // 128 * 128)
    if block_k is not None:
        tk_cap = max(128, min(tk_cap, _round_up(int(block_k), 128)))
    if tk_cap >= feat:
        tk, n_k = feat, 1                      # single step, no masking needed
    else:
        n_k = pl.cdiv(feat, tk_cap)
        tk = _round_up(pl.cdiv(feat, n_k), 128)
    ragged_k = (tk * n_k) != feat

    bias_smem = bias.reshape(-1).astype(jnp.float32)
    kernel = functools.partial(_fc_tanh_kernel, feat=feat, tk=tk, ragged_k=ragged_k)

    return pl.pallas_call(
        kernel,
        out_shape=jax.ShapeDtypeStruct((batch, 1), x.dtype),
        grid_spec=pltpu.PrefetchScalarGridSpec(
            num_scalar_prefetch=1,  # bias -> SMEM scalar
            grid=(n_b, n_k),
            in_specs=[
                pl.BlockSpec((tm, tk), lambda b, k, _: (b, k)),  # x tile
                pl.BlockSpec((1, tk), lambda b, k, _: (0, k)),   # weight tile
            ],
            out_specs=pl.BlockSpec((tm, 1), lambda b, k, _: (b, 0)),
            scratch_shapes=[pltpu.VMEM((tm, 1), jnp.float32)],
        ),
        compiler_params=pltpu.CompilerParams(
            dimension_semantics=("parallel", "arbitrary"),
            vmem_limit_bytes=32 * 1024 * 1024,
        ),
    )(bias_smem, x_flat, weight)


def init_generator_params(key, flatten_size, output_size, dtype=jnp.float32):
    """Deterministic init matching nn.Linear(flatten_size, output_size) shapes."""
    kw, kb = jax.random.split(key)
    bound = 1.0 / (flatten_size ** 0.5)
    weight = jax.random.uniform(
        kw, (output_size, flatten_size), dtype, minval=-bound, maxval=bound
    )
    bias = jax.random.uniform(
        kb, (output_size,), dtype, minval=-bound, maxval=bound
    )
    return weight, bias  # PyTorch layout: (O, F), (O,)


if __name__ == "__main__":
    OUT = 1
    key = jax.random.PRNGKey(0)
    k_x1, k_x2, k_p1, k_p2 = jax.random.split(key, 4)

    def reference(xs, w, b):
        flat = xs.reshape(-1, w.shape[1])
        pre = jnp.dot(flat, w.T, precision=jax.lax.Precision.HIGHEST)
        return jnp.tanh(pre + b[None, :])

    # Case 1: mirrors the module's usage (batch 1, flattened seq*hidden) at a
    # small shape -> single grid step, no padding, no masking.
    S1, H1 = 8, 32            # flatten_size = 256
    w1, b1 = init_generator_params(k_p1, S1 * H1, OUT)
    x1 = jax.random.normal(k_x1, (1, S1, H1), dtype=jnp.float32)
    y1 = jax.block_until_ready(generator_forward(x1, w1, b1))
    assert y1.shape == (1, OUT)
    assert jnp.allclose(y1, reference(x1, w1, b1), atol=1e-4, rtol=1e-4)

    # Case 2: exercises batch tiling (3 tiles, ragged last) and the K-reduction
    # grid axis with a ragged, in-kernel-masked last feature tile.
    S2, H2 = 8, 40            # flatten_size = 320 (not a multiple of 128)
    w2, b2 = init_generator_params(k_p2, S2 * H2, OUT)
    x2 = jax.random.normal(k_x2, (300, S2, H2), dtype=jnp.float32)
    y2 = jax.block_until_ready(
        generator_forward(x2, w2, b2, block_m=128, block_k=128)
    )
    assert y2.shape == (300, OUT)
    assert jnp.allclose(y2, reference(x2, w2, b2), atol=1e-4, rtol=1e-4)

    print("KERNEL_OK")
</pallas_src>

<mosaic_0001>
module attributes {stable_mosaic.version = 11 : i64} {
  func.func @_fc_tanh_kernel(%arg0: i32, %arg1: i32, %arg2: memref<1xf32, #tpu.memory_space<smem>>, %arg3: memref<1x256xf32, #tpu.memory_space<vmem>>, %arg4: memref<1x256xf32, #tpu.memory_space<vmem>>, %arg5: memref<1x1xf32, #tpu.memory_space<vmem>>, %arg6: memref<1x1xf32, #tpu.memory_space<vmem>>) attributes {dimension_semantics = [#tpu.dimension_semantics<parallel>, #tpu.dimension_semantics<arbitrary>], iteration_bounds = array<i64: 1, 1>, scalar_prefetch = 1 : i64, scratch_operands = 1 : i64, tpu.core_type = #tpu.core_type<tc>, window_params = [{transform_indices = @transform_0, window_bounds = array<i64: 1, 256>}, {transform_indices = @transform_1, window_bounds = array<i64: 1, 256>}, {transform_indices = @transform_2, window_bounds = array<i64: 1, 1>}]} {
    %c0_i32 = arith.constant 0 : i32
    %0 = arith.cmpi eq, %arg1, %c0_i32 : i32
    %1 = arith.extui %0 : i1 to i32
    %c0_i32_0 = arith.constant 0 : i32
    %2 = arith.cmpi ne, %1, %c0_i32_0 : i32
    scf.if %2 {
      %cst_10 = arith.constant 0.000000e+00 : f32
      %14 = vector.broadcast %cst_10 : f32 to vector<1x1xf32>
      %c0_11 = arith.constant 0 : index
      %c0_12 = arith.constant 0 : index
      %15 = vector.load %arg6[%c0_11, %c0_12] : memref<1x1xf32, #tpu.memory_space<vmem>>, vector<1x1xf32>
      tpu.vector_store %arg6[%c0_11, %c0_12], %14 {strides = array<i32>} : memref<1x1xf32, #tpu.memory_space<vmem>>, vector<1x1xf32>,
    } else {
    }
    %c0 = arith.constant 0 : index
    %c0_1 = arith.constant 0 : index
    %3 = vector.load %arg3[%c0, %c0_1] : memref<1x256xf32, #tpu.memory_space<vmem>>, vector<1x256xf32>
    %c0_2 = arith.constant 0 : index
    %c0_3 = arith.constant 0 : index
    %4 = vector.load %arg4[%c0_2, %c0_3] : memref<1x256xf32, #tpu.memory_space<vmem>>, vector<1x256xf32>
    %5 = arith.mulf %3, %4 : vector<1x256xf32>
    %c0_4 = arith.constant 0 : index
    %c0_5 = arith.constant 0 : index
    %6 = vector.load %arg6[%c0_4, %c0_5] : memref<1x1xf32, #tpu.memory_space<vmem>>, vector<1x1xf32>
    %cst = arith.constant dense<0.000000e+00> : vector<1xf32>
    %7 = vector.multi_reduction <add>, %5, %cst [1] : vector<1x256xf32> to vector<1xf32>
    %8 = vector.shape_cast %7 : vector<1xf32> to vector<1x1xf32>
    %9 = arith.addf %6, %8 : vector<1x1xf32>
    %c0_6 = arith.constant 0 : index
    %c0_7 = arith.constant 0 : index
    %10 = vector.load %arg6[%c0_6, %c0_7] : memref<1x1xf32, #tpu.memory_space<vmem>>, vector<1x1xf32>
    tpu.vector_store %arg6[%c0_6, %c0_7], %9 {strides = array<i32>} : memref<1x1xf32, #tpu.memory_space<vmem>>, vector<1x1xf32>,
    %c0_i32_8 = arith.constant 0 : i32
    %11 = arith.cmpi eq, %arg1, %c0_i32_8 : i32
    %12 = arith.extui %11 : i1 to i32
    %c0_i32_9 = arith.constant 0 : i32
    %13 = arith.cmpi ne, %12, %c0_i32_9 : i32
    scf.if %13 {
      %c0_10 = arith.constant 0 : index
      %c0_11 = arith.constant 0 : index
      %14 = vector.load %arg6[%c0_10, %c0_11] : memref<1x1xf32, #tpu.memory_space<vmem>>, vector<1x1xf32>
      %c0_12 = arith.constant 0 : index
      %15 = memref.load %arg2[%c0_12] : memref<1xf32, #tpu.memory_space<smem>>
      %16 = vector.broadcast %15 : f32 to vector<1x1xf32>
      %17 = arith.addf %14, %16 : vector<1x1xf32>
      %18 = math.tanh %17 : vector<1x1xf32>
      %c0_13 = arith.constant 0 : index
      %c0_14 = arith.constant 0 : index
      %19 = vector.load %arg5[%c0_13, %c0_14] : memref<1x1xf32, #tpu.memory_space<vmem>>, vector<1x1xf32>
      tpu.vector_store %arg5[%c0_13, %c0_14], %18 {strides = array<i32>} : memref<1x1xf32, #tpu.memory_space<vmem>>, vector<1x1xf32>,
    } else {
    }
    return
  }
  func.func @transform_0(%arg0: i32, %arg1: i32, %arg2: memref<1xf32, #tpu.memory_space<smem>>) -> (i32, i32) {
    %c0_i32 = arith.constant 0 : i32
    return %arg0, %arg1 : i32, i32
  }
  func.func @transform_1(%arg0: i32, %arg1: i32, %arg2: memref<1xf32, #tpu.memory_space<smem>>) -> (i32, i32) {
    %c0_i32 = arith.constant 0 : i32
    %c0_i32_0 = arith.constant 0 : i32
    return %c0_i32, %arg1 : i32, i32
  }
  func.func @transform_2(%arg0: i32, %arg1: i32, %arg2: memref<1xf32, #tpu.memory_space<smem>>) -> (i32, i32) {
    %c0_i32 = arith.constant 0 : i32
    %c0_i32_0 = arith.constant 0 : i32
    return %arg0, %c0_i32 : i32, i32
  }
}

</mosaic_0001>

<bundles_post_ra>
// kernel: tpu_custom_call.1
= control target key start
LH: loop header
LB: loop body
LE: loop exit
PB: predicated region body
PF: predicated region fallthrough
CT: control target
= control target key end

     0   :  { %v25_v2 = vlaneseq  ;;  %vm18_vm0 = vcmask 0   ;;  %s141_s0 = inlined_call_operand.<no memory space> [shape: f32[1], index: 0, kind: input, shape index: {}]   ;;  %s142_s1 = inlined_call_operand.vmem [shape: f32[1,256], index: 1, kind: input, shape index: {}]   ;;  %s143_s2 = inlined_call_operand.vmem [shape: f32[1,256], index: 2, kind: input, shape index: {}]   ;;  %s144_s3 = inlined_call_operand.hbm [shape: f32[1,1], index: 3, kind: output, shape index: {}]  }
   0x1   :  { %v20_v0 = vld [vmem:[%s142_s1] sm:$0x3] }
   0x2   :  { %v21_v1 = vld [vmem:[%s143_s2] sm:$0x3] }
   0x3   :  { %9 = vsyncpa [#allocation6], 0  ;;  %v22_v3 = vmul.f32 %v21_v1, %v20_v0  ;;  %v26_v4 = vshrl.u32 %v25_v2, 7  ;;  %v95_v5 = vmov 0.0   ;;  %vm35_vm1 = vcmask 1040384   ;;  %s96_s16 = smov [#allocation5]  }
   0x4   :  { %19 = vst.msk [vmem:[#allocation2] sm:$0x1] %vm18_vm0, %v95_v5  ;;  %v49_v16 = vstv %s141_s0  ;;  %s59_s17 = sshll.u32 %s96_s16, 4  ;;  %s60_s17 = int_to_ptr.vmem [resolvable:$true] %s59_s17 }
   0x5   :  { %v27_v6 = vsub.s32 0, %v26_v4  ;;  %v31_v7 = vsub.s32 1, %v26_v4  ;;  %s71_s18 = scalar_lea.vmem %s60_s17, 16  ;;  %s75_s19 = scalar_lea.vmem %s60_s17, 32 }
   0x6   :  { %p72_p0 = scmp.ne.s32.totalorder %s60_s17, %s71_s18  ;;  %p76_p1 = scmp.lt.s32.totalorder %s60_s17, %s60_s17 }
   0x7   :  { %v28_v8 = vrot.slane %v22_v3, %v27_v6  ;;  %v32_v9 = vrot.slane %v22_v3, %v31_v7  ;;  %p77_p2 = scmp.lt.s32.totalorder %s75_s19, %s71_s18 }
   0x9   :  { %v36_v10 = vsel %vm35_vm1, %v28_v8, 0.0  ;;  %v37_v11 = vsel %vm35_vm1, %v32_v9, 0.0  ;;  %p78_p3 = por %p77_p2, %p76_p1 }
   0xa   :  { %v38_v12 = vadd.f32 %v37_v11, %v36_v10 }
   0xb   :  { %v23_v13 = vld [vmem:[#allocation2] sm:$0x1]  ;;  %p79_p4 = pnand %p78_p3, %p72_p0 }
   0xc   :  { %39 = vadd.xlane.f32.xlu0 %v38_v12 }
  0x99   :  { %v40_v14 = vpop.xlane.xlu0 %39 }
  0x9a   :  { %v41_v15 = vadd.f32 %v40_v14, %v23_v13 }
  0x9c   :  { %43 = vst.msk [vmem:[#allocation2] sm:$0x1] %vm18_vm0, %v41_v15 }
  0xa3   :  { %v47_v17 = vld [vmem:[#allocation2] sm:$0x1] }
  0xa4   :  { %v50_v18 = vadd.f32 %v49_v16, %v47_v17 }
  0xa6   :  { %69 = vtanh.f32 %v50_v18 }
  0xb0   :  { %v70_v19 = vpop.eup %69 }
  0xb1   :  { %52 = vst.msk [vmem:[#allocation5] sm:$0x1] %vm18_vm0, %v70_v19 }
  0xb2   :  { %82 = shalt.err (!%p79_p4)
}
  0xb3   :  { %s83_s0 = scalar_lea.hbm %s144_s3, 16 }
  0xb4   :  { %p84_p5 = scmp.ne.s32.totalorder %s144_s3, %s83_s0  ;;  %p87_p6 = scmp.lt.u32.totalorder %s83_s0, %s144_s3 }
  0xb6   :  { %p89_p7 = pnand %p87_p6, %p84_p5 }
  0xb8   :  { %92 = shalt.err (!%p89_p7)
}
  0xb9   :  { %62 = dma.vmem_to_hbm [thread:$0]  %s60_s17, 16, %s144_s3, [#allocation6]  }
  0xba   :  { %93 = dma.done.wait [#allocation6], 16  }
  0xbb   :  { %94 = vsyncadd [#allocation6], 4294967280 }
  0xbc   :  { %66 = vsyncpa [#allocation6], 1 }

</bundles_post_ra>
